<compile_context>
chip_gen: v5e
topology: v5e:2x2
jax: 0.10.0
libtpu: 0.0.40
codegen_flags: <defaults>
</compile_context>

<pallas_src>
import functools

import jax
import jax.numpy as jnp
from jax import lax
from jax.experimental import pallas as pl
from jax.experimental.pallas import tpu as pltpu

LN_EPS = 1e-5
LANE = 128
SUBLANE = 8


def _round_up(x, m):
    return (x + m - 1) // m * m


# ----------------------------- Pallas kernel --------------------------------


def mlp_fused_kernel(
    x_ref,        # (tb, din_p)        input tile (edge blocks may hold garbage)
    fn_ref,       # (2, din_p)         [feature-norm gamma ; beta]
    w1_ref,       # (din_p, h_p)       fc1 weight, stored in the MXU dtype
    p1_ref,       # (3, h_p)           [b1 ; ln1 gamma ; ln1 beta]
    wh_ref,       # (ln_eff, h_p, h_p) stacked hidden-layer weights
    ph_ref,       # (ln_eff, 3, h_p)   stacked [bh ; gamma ; beta]
    o_ref,        # (tb, h_p)
    *,
    layer_N, d_in, d_hid, use_feature_normalization, use_relu,
):
    din_p = w1_ref.shape[0]
    h_p = w1_ref.shape[1]
    mxu_dtype = w1_ref.dtype

    # Hoisted lane masks; only built when a dim actually has lane padding.
    in_mask = None
    if d_in != din_p:
        in_mask = (lax.broadcasted_iota(jnp.int32, (1, din_p), 1) < d_in).astype(jnp.float32)
    hid_mask = None
    if d_hid != h_p:
        hid_mask = (lax.broadcasted_iota(jnp.int32, (1, h_p), 1) < d_hid).astype(jnp.float32)

    def layer_norm(y, inv_count, gamma, beta, mask):
        # y's padded lanes are exactly 0 -> the unmasked sum is the valid sum.
        mean = jnp.sum(y, axis=-1, keepdims=True) * inv_count
        cen = y - mean
        cen_v = cen if mask is None else cen * mask          # only var needs the mask
        var = jnp.sum(cen_v * cen_v, axis=-1, keepdims=True) * inv_count
        # gamma/beta are zero on padded lanes -> padded output lanes stay 0.
        return cen * lax.rsqrt(var + LN_EPS) * gamma + beta

    def act(y):
        return jnp.maximum(y, 0.0) if use_relu else jnp.tanh(y)

    def linear_act_ln(h, w, b, gamma, beta):
        # Weights already in the MXU dtype; only the activation tile is cast.
        y = jnp.dot(h.astype(mxu_dtype), w, preferred_element_type=jnp.float32) + b
        return layer_norm(act(y), 1.0 / float(d_hid), gamma, beta, hid_mask)

    x = x_ref[...].astype(jnp.float32)
    if in_mask is not None:
        # Partial edge blocks: out-of-bounds lanes hold unspecified values.
        # Zero them with a select (a multiply would not kill NaN garbage).
        x = jnp.where(in_mask > 0.0, x, 0.0)

    if use_feature_normalization:
        fn = fn_ref[...]
        x = layer_norm(x, 1.0 / float(d_in), fn[0:1], fn[1:2], in_mask)

    # fc1
    p1 = p1_ref[...]
    x = linear_act_ln(x, w1_ref[...], p1[0:1], p1[1:2], p1[2:3])

    # fc2 clones (layer_N is small & static in PPO -> unrolled Python loop).
    # TODO(synk): for very large hidden sizes on v7x (64 MiB VMEM), stream Wh
    # per layer (layer grid axis or pltpu.emit_pipeline) instead of keeping the
    # whole stack resident.
    for l in range(layer_N):
        p = ph_ref[l]
        x = linear_act_ln(x, wh_ref[l], p[0:1], p[1:2], p[2:3])

    o_ref[...] = x.astype(o_ref.dtype)


# ------------------------------ JAX wrapper ----------------------------------


def _vmem_capacity_bytes():
    try:
        cap = getattr(pltpu.get_tpu_info(), "vmem_capacity_bytes", None)
        if cap:
            return int(cap)
    except Exception:
        pass
    return 64 << 20  # conservative fallback: v7x per-TensorCore VMEM


def _vmem_estimate_bytes(tb, din_p, h_p, ln_eff, w_itemsize):
    f32 = 4
    acts = 2 * tb * (din_p + h_p) * f32                               # double-buffered x/out tiles
    weights = 2 * (din_p * h_p + ln_eff * h_p * h_p) * w_itemsize     # resident weights (2 bufs)
    small = 2 * 8 * (din_p + h_p + ln_eff * h_p) * f32                # sublane-padded param slabs
    temps = 6 * tb * max(din_p, h_p) * f32                            # casts + LN temporaries
    return acts + weights + small + temps


def _choose_tb(B, din_p, h_p, ln_eff, w_itemsize, vmem_cap):
    tb = min(512, _round_up(B, SUBLANE))
    # Keep >=2 batch tiles when the batch allows it: both v7x TensorCores get
    # work via the "parallel" grid axis and the pipeline can prefetch tile i+1.
    if B >= 2 * SUBLANE and pl.cdiv(B, tb) < 2:
        tb = _round_up(pl.cdiv(B, 2), SUBLANE)
    # Shrink tiles until resident weights + streamed activation buffers fit.
    weight_bytes = 2 * (din_p * h_p + ln_eff * h_p * h_p) * w_itemsize
    budget = int(0.45 * vmem_cap)
    while tb > SUBLANE and weight_bytes + 2 * tb * (din_p + h_p) * 4 > budget:
        tb = _round_up(max(tb // 2, SUBLANE), SUBLANE)
    return tb


@functools.partial(
    jax.jit,
    static_argnames=("layer_N", "d_in", "d_hid",
                     "use_feature_normalization", "use_relu"),
)
def mlp_base_forward(params, x, *, layer_N, d_in, d_hid,
                     use_feature_normalization, use_relu):
    B = x.shape[0]
    din_p, h_p = params["w1_t"].shape
    ln_eff = params["wh_t"].shape[0]        # max(layer_N, 1); dummy unused if layer_N == 0
    w_itemsize = params["w1_t"].dtype.itemsize

    vmem_cap = _vmem_capacity_bytes()
    tb = _choose_tb(B, din_p, h_p, ln_eff, w_itemsize, vmem_cap)
    grid = (pl.cdiv(B, tb),)

    est = _vmem_estimate_bytes(tb, din_p, h_p, ln_eff, w_itemsize)
    vmem_limit = int(min(int(0.9 * vmem_cap), max(32 << 20, 2 * est)))

    kernel = functools.partial(
        mlp_fused_kernel,
        layer_N=layer_N, d_in=d_in, d_hid=d_hid,
        use_feature_normalization=use_feature_normalization,
        use_relu=use_relu,
    )

    # TODO(synk): single-buffer the grid-invariant weight BlockSpecs via
    # pipeline_mode=pl.Buffered(1) once confirmed supported for top-level
    # pallas_call pipelines (halves resident weight VMEM on v7x).
    return pl.pallas_call(
        kernel,
        out_shape=jax.ShapeDtypeStruct((B, d_hid), x.dtype),
        grid_spec=pltpu.PrefetchScalarGridSpec(
            num_scalar_prefetch=0,
            grid=grid,
            in_specs=[
                pl.BlockSpec((tb, din_p), lambda i: (i, 0)),            # x tile
                pl.BlockSpec((2, din_p), lambda i: (0, 0)),             # feature-norm gamma/beta
                pl.BlockSpec((din_p, h_p), lambda i: (0, 0)),           # W1^T
                pl.BlockSpec((3, h_p), lambda i: (0, 0)),               # b1 / ln1 gamma / ln1 beta
                pl.BlockSpec((ln_eff, h_p, h_p), lambda i: (0, 0, 0)),  # stacked Wh^T
                pl.BlockSpec((ln_eff, 3, h_p), lambda i: (0, 0, 0)),    # stacked bh / gamma / beta
            ],
            out_specs=pl.BlockSpec((tb, h_p), lambda i: (i, 0)),
        ),
        compiler_params=pltpu.CompilerParams(
            dimension_semantics=("parallel",),
            vmem_limit_bytes=vmem_limit,
        ),
    )(x, params["fn"], params["w1_t"], params["p1"], params["wh_t"], params["ph"])


# ------------------------- deterministic parameters --------------------------


def orthogonal_init(key, shape, gain):
    # mimics torch.nn.init.orthogonal_ for 2-D weight [out, in]
    rows, cols = shape
    flat = jax.random.normal(key, (rows, cols), dtype=jnp.float32)
    if rows < cols:
        flat = flat.T
    q, r = jnp.linalg.qr(flat)
    q = q * jnp.sign(jnp.diag(r))
    if rows < cols:
        q = q.T
    return gain * q[:rows, :cols]


def make_params(key, input_dim, hidden_size, layer_N, use_relu,
                weight_dtype=jnp.float32):
    """Kernel-ready params: lane-padded, small vectors fused into slabs, large
    weights pre-cast ONCE to the MXU dtype (no per-step casts in the kernel)."""
    gain = jnp.sqrt(2.0) if use_relu else (5.0 / 3.0)   # relu / tanh gains
    din_p = _round_up(input_dim, LANE)
    h_p = _round_up(hidden_size, LANE)
    ln_eff = max(layer_N, 1)

    keys = jax.random.split(key, 1 + ln_eff)

    def pad_lane(v, width):
        return jnp.pad(v, (0, width - v.shape[0]))

    ones_h = pad_lane(jnp.ones((hidden_size,), jnp.float32), h_p)
    zeros_h = pad_lane(jnp.zeros((hidden_size,), jnp.float32), h_p)

    params = {}
    # feature-norm gamma (=1 on valid lanes, 0 on padding) and beta, stacked.
    params["fn"] = jnp.stack([
        pad_lane(jnp.ones((input_dim,), jnp.float32), din_p),
        pad_lane(jnp.zeros((input_dim,), jnp.float32), din_p),
    ])

    # fc1
    w1 = orthogonal_init(keys[0], (hidden_size, input_dim), gain)   # torch [out, in]
    params["w1_t"] = jnp.pad(
        w1.T, ((0, din_p - input_dim), (0, h_p - hidden_size))).astype(weight_dtype)
    params["p1"] = jnp.stack([zeros_h, ones_h, zeros_h])            # [b1 ; gamma ; beta]

    # fc2 clones, stacked
    wh_list, ph_list = [], []
    for l in range(layer_N):
        wh = orthogonal_init(keys[1 + l], (hidden_size, hidden_size), gain)
        wh_list.append(jnp.pad(
            wh.T, ((0, h_p - hidden_size), (0, h_p - hidden_size))).astype(weight_dtype))
        ph_list.append(jnp.stack([zeros_h, ones_h, zeros_h]))
    if layer_N == 0:   # dummy, never used by the kernel loop
        wh_list = [jnp.zeros((h_p, h_p), weight_dtype)]
        ph_list = [jnp.zeros((3, h_p), jnp.float32)]
    params["wh_t"] = jnp.stack(wh_list)                             # [ln_eff, H_p, H_p]
    params["ph"] = jnp.stack(ph_list)                               # [ln_eff, 3, H_p]
    return params


# ------------------------------ pure-JAX reference ---------------------------


def ref_forward(params, x, *, layer_N, d_in, d_hid, use_feature_normalization, use_relu):
    def ln(v, g, b):
        m = jnp.mean(v, -1, keepdims=True)
        var = jnp.mean((v - m) ** 2, -1, keepdims=True)
        return (v - m) * lax.rsqrt(var + LN_EPS) * g + b

    act = (lambda v: jnp.maximum(v, 0.0)) if use_relu else jnp.tanh
    if use_feature_normalization:
        x = ln(x, params["fn"][0, :d_in], params["fn"][1, :d_in])
    w1 = params["w1_t"].astype(jnp.float32)[:d_in, :d_hid]
    x = ln(act(x @ w1 + params["p1"][0, :d_hid]),
           params["p1"][1, :d_hid], params["p1"][2, :d_hid])
    for l in range(layer_N):
        wh = params["wh_t"][l].astype(jnp.float32)[:d_hid, :d_hid]
        x = ln(act(x @ wh + params["ph"][l, 0, :d_hid]),
               params["ph"][l, 1, :d_hid], params["ph"][l, 2, :d_hid])
    return x


# --------------------------------- main --------------------------------------

if __name__ == "__main__":
    # args equivalent
    use_feature_normalization = True
    use_orthogonal = True   # reflected in the orthogonal init above
    use_relu = True
    layer_N = 1
    hidden_size = 32
    input_dim = 24
    batch = 8

    key = jax.random.PRNGKey(0)
    kx, kp = jax.random.split(key)
    x = jax.random.normal(kx, (batch, input_dim), dtype=jnp.float32)

    # bf16 MXU path (f32 accumulation) from hidden_size >= 128; keep f32 at
    # this tiny demo shape so the kernel matches the f32 reference tightly.
    weight_dtype = jnp.bfloat16 if hidden_size >= 128 else jnp.float32
    params = make_params(kp, input_dim, hidden_size, layer_N, use_relu,
                         weight_dtype=weight_dtype)

    out = mlp_base_forward(
        params, x,
        layer_N=layer_N, d_in=input_dim, d_hid=hidden_size,
        use_feature_normalization=use_feature_normalization,
        use_relu=use_relu,
    )
    out = jax.block_until_ready(out)
    assert out.shape == (batch, hidden_size), out.shape

    ref = ref_forward(
        params, x,
        layer_N=layer_N, d_in=input_dim, d_hid=hidden_size,
        use_feature_normalization=use_feature_normalization, use_relu=use_relu,
    )
    tol = 1e-4 if weight_dtype == jnp.float32 else 3e-2
    max_err = float(jnp.max(jnp.abs(out - ref)))
    assert max_err < tol, f"mismatch vs reference: {max_err}"

    print("KERNEL_OK")
</pallas_src>

<mosaic_0001>
module attributes {stable_mosaic.version = 11 : i64} {
  func.func @mlp_fused_kernel(%arg0: i32, %arg1: memref<8x128xf32, #tpu.memory_space<vmem>>, %arg2: memref<2x128xf32, #tpu.memory_space<vmem>>, %arg3: memref<128x128xf32, #tpu.memory_space<vmem>>, %arg4: memref<3x128xf32, #tpu.memory_space<vmem>>, %arg5: memref<1x128x128xf32, #tpu.memory_space<vmem>>, %arg6: memref<1x3x128xf32, #tpu.memory_space<vmem>>, %arg7: memref<8x128xf32, #tpu.memory_space<vmem>>) attributes {dimension_semantics = [#tpu.dimension_semantics<parallel>], iteration_bounds = array<i64: 1>, scalar_prefetch = 0 : i64, scratch_operands = 0 : i64, tpu.core_type = #tpu.core_type<tc>, window_params = [{transform_indices = @transform_0, window_bounds = array<i64: 8, 128>}, {pipeline_mode = #tpu.pipeline_mode<synchronous>, transform_indices = @transform_1, window_bounds = array<i64: 2, 128>}, {pipeline_mode = #tpu.pipeline_mode<synchronous>, transform_indices = @transform_2, window_bounds = array<i64: 128, 128>}, {pipeline_mode = #tpu.pipeline_mode<synchronous>, transform_indices = @transform_3, window_bounds = array<i64: 3, 128>}, {pipeline_mode = #tpu.pipeline_mode<synchronous>, transform_indices = @transform_4, window_bounds = array<i64: 1, 128, 128>}, {pipeline_mode = #tpu.pipeline_mode<synchronous>, transform_indices = @transform_5, window_bounds = array<i64: 1, 3, 128>}, {transform_indices = @transform_6, window_bounds = array<i64: 8, 128>}]} {
    %0 = tpu.iota {dimensions = array<i32: 1>} : vector<1x128xi32>
    %c24_i32 = arith.constant 24 : i32
    %1 = vector.broadcast %c24_i32 : i32 to vector<1x128xi32>
    %2 = arith.cmpi slt, %0, %1 : vector<1x128xi32>
    %3 = arith.extui %2 : vector<1x128xi1> to vector<1x128xi32>
    %4 = arith.sitofp %3 : vector<1x128xi32> to vector<1x128xf32>
    %5 = tpu.iota {dimensions = array<i32: 1>} : vector<1x128xi32>
    %c32_i32 = arith.constant 32 : i32
    %6 = vector.broadcast %c32_i32 : i32 to vector<1x128xi32>
    %7 = arith.cmpi slt, %5, %6 : vector<1x128xi32>
    %8 = arith.extui %7 : vector<1x128xi1> to vector<1x128xi32>
    %9 = arith.sitofp %8 : vector<1x128xi32> to vector<1x128xf32>
    %c0 = arith.constant 0 : index
    %c0_0 = arith.constant 0 : index
    %10 = vector.load %arg1[%c0, %c0_0] : memref<8x128xf32, #tpu.memory_space<vmem>>, vector<8x128xf32>
    %cst = arith.constant 0.000000e+00 : f32
    %11 = vector.broadcast %cst : f32 to vector<1x128xf32>
    %12 = arith.cmpf ogt, %4, %11 : vector<1x128xf32>
    %cst_1 = arith.constant 0.000000e+00 : f32
    %13 = vector.shape_cast %12 : vector<1x128xi1> to vector<1x128xi1>
    %14 = vector.broadcast %13 : vector<1x128xi1> to vector<8x128xi1>
    %15 = vector.broadcast %cst_1 : f32 to vector<8x128xf32>
    %16 = arith.select %14, %10, %15 : vector<8x128xi1>, vector<8x128xf32>
    %c0_2 = arith.constant 0 : index
    %c0_3 = arith.constant 0 : index
    %17 = vector.load %arg2[%c0_2, %c0_3] : memref<2x128xf32, #tpu.memory_space<vmem>>, vector<2x128xf32>
    %18 = vector.extract_strided_slice %17 {offsets = [0, 0], sizes = [1, 128], strides = [1, 1]} : vector<2x128xf32> to vector<1x128xf32>
    %19 = vector.extract_strided_slice %17 {offsets = [1, 0], sizes = [1, 128], strides = [1, 1]} : vector<2x128xf32> to vector<1x128xf32>
    %cst_4 = arith.constant dense<0.000000e+00> : vector<8xf32>
    %20 = vector.multi_reduction <add>, %16, %cst_4 [1] : vector<8x128xf32> to vector<8xf32>
    %21 = vector.shape_cast %20 : vector<8xf32> to vector<8x1xf32>
    %cst_5 = arith.constant 0.0416666679 : f32
    %22 = vector.broadcast %cst_5 : f32 to vector<8x1xf32>
    %23 = arith.mulf %21, %22 : vector<8x1xf32>
    %24 = vector.broadcast %23 : vector<8x1xf32> to vector<8x128xf32>
    %25 = arith.subf %16, %24 : vector<8x128xf32>
    %26 = vector.broadcast %4 : vector<1x128xf32> to vector<8x128xf32>
    %27 = arith.mulf %25, %26 : vector<8x128xf32>
    %28 = arith.mulf %27, %27 : vector<8x128xf32>
    %cst_6 = arith.constant dense<0.000000e+00> : vector<8xf32>
    %29 = vector.multi_reduction <add>, %28, %cst_6 [1] : vector<8x128xf32> to vector<8xf32>
    %30 = vector.shape_cast %29 : vector<8xf32> to vector<8x1xf32>
    %cst_7 = arith.constant 0.0416666679 : f32
    %31 = vector.broadcast %cst_7 : f32 to vector<8x1xf32>
    %32 = arith.mulf %30, %31 : vector<8x1xf32>
    %cst_8 = arith.constant 9.99999974E-6 : f32
    %33 = vector.broadcast %cst_8 : f32 to vector<8x1xf32>
    %34 = arith.addf %32, %33 : vector<8x1xf32>
    %35 = math.rsqrt %34 : vector<8x1xf32>
    %36 = vector.broadcast %35 : vector<8x1xf32> to vector<8x128xf32>
    %37 = arith.mulf %25, %36 : vector<8x128xf32>
    %38 = vector.broadcast %18 : vector<1x128xf32> to vector<8x128xf32>
    %39 = arith.mulf %37, %38 : vector<8x128xf32>
    %40 = vector.broadcast %19 : vector<1x128xf32> to vector<8x128xf32>
    %41 = arith.addf %39, %40 : vector<8x128xf32>
    %c0_9 = arith.constant 0 : index
    %c0_10 = arith.constant 0 : index
    %42 = vector.load %arg4[%c0_9, %c0_10] : memref<3x128xf32, #tpu.memory_space<vmem>>, vector<3x128xf32>
    %c0_11 = arith.constant 0 : index
    %c0_12 = arith.constant 0 : index
    %43 = vector.load %arg3[%c0_11, %c0_12] : memref<128x128xf32, #tpu.memory_space<vmem>>, vector<128x128xf32>
    %44 = vector.extract_strided_slice %42 {offsets = [0, 0], sizes = [1, 128], strides = [1, 1]} : vector<3x128xf32> to vector<1x128xf32>
    %45 = vector.extract_strided_slice %42 {offsets = [1, 0], sizes = [1, 128], strides = [1, 1]} : vector<3x128xf32> to vector<1x128xf32>
    %46 = vector.extract_strided_slice %42 {offsets = [2, 0], sizes = [1, 128], strides = [1, 1]} : vector<3x128xf32> to vector<1x128xf32>
    %cst_13 = arith.constant dense<0.000000e+00> : vector<8x128xf32>
    %47 = tpu.matmul %41, %43, %cst_13 {dimension_numbers = #tpu.dot_dimension_numbers<[1], [0], [0], [1], [0, 0, 1, 1], [], []>} : vector<8x128xf32>, vector<128x128xf32>, vector<8x128xf32> -> vector<8x128xf32>
    %48 = vector.broadcast %44 : vector<1x128xf32> to vector<8x128xf32>
    %49 = arith.addf %47, %48 : vector<8x128xf32>
    %cst_14 = arith.constant 0.000000e+00 : f32
    %50 = vector.broadcast %cst_14 : f32 to vector<8x128xf32>
    %51 = arith.maximumf %49, %50 : vector<8x128xf32>
    %cst_15 = arith.constant dense<0.000000e+00> : vector<8xf32>
    %52 = vector.multi_reduction <add>, %51, %cst_15 [1] : vector<8x128xf32> to vector<8xf32>
    %53 = vector.shape_cast %52 : vector<8xf32> to vector<8x1xf32>
    %cst_16 = arith.constant 3.125000e-02 : f32
    %54 = vector.broadcast %cst_16 : f32 to vector<8x1xf32>
    %55 = arith.mulf %53, %54 : vector<8x1xf32>
    %56 = vector.broadcast %55 : vector<8x1xf32> to vector<8x128xf32>
    %57 = arith.subf %51, %56 : vector<8x128xf32>
    %58 = vector.broadcast %9 : vector<1x128xf32> to vector<8x128xf32>
    %59 = arith.mulf %57, %58 : vector<8x128xf32>
    %60 = arith.mulf %59, %59 : vector<8x128xf32>
    %cst_17 = arith.constant dense<0.000000e+00> : vector<8xf32>
    %61 = vector.multi_reduction <add>, %60, %cst_17 [1] : vector<8x128xf32> to vector<8xf32>
    %62 = vector.shape_cast %61 : vector<8xf32> to vector<8x1xf32>
    %cst_18 = arith.constant 3.125000e-02 : f32
    %63 = vector.broadcast %cst_18 : f32 to vector<8x1xf32>
    %64 = arith.mulf %62, %63 : vector<8x1xf32>
    %cst_19 = arith.constant 9.99999974E-6 : f32
    %65 = vector.broadcast %cst_19 : f32 to vector<8x1xf32>
    %66 = arith.addf %64, %65 : vector<8x1xf32>
    %67 = math.rsqrt %66 : vector<8x1xf32>
    %68 = vector.broadcast %67 : vector<8x1xf32> to vector<8x128xf32>
    %69 = arith.mulf %57, %68 : vector<8x128xf32>
    %70 = vector.broadcast %45 : vector<1x128xf32> to vector<8x128xf32>
    %71 = arith.mulf %69, %70 : vector<8x128xf32>
    %72 = vector.broadcast %46 : vector<1x128xf32> to vector<8x128xf32>
    %73 = arith.addf %71, %72 : vector<8x128xf32>
    %c0_20 = arith.constant 0 : index
    %c0_21 = arith.constant 0 : index
    %c0_22 = arith.constant 0 : index
    %74 = vector.load %arg6[%c0_20, %c0_21, %c0_22] : memref<1x3x128xf32, #tpu.memory_space<vmem>>, vector<1x3x128xf32>
    %75 = vector.shape_cast %74 : vector<1x3x128xf32> to vector<3x128xf32>
    %c0_23 = arith.constant 0 : index
    %c0_24 = arith.constant 0 : index
    %c0_25 = arith.constant 0 : index
    %76 = vector.load %arg5[%c0_23, %c0_24, %c0_25] : memref<1x128x128xf32, #tpu.memory_space<vmem>>, vector<1x128x128xf32>
    %77 = vector.shape_cast %76 : vector<1x128x128xf32> to vector<128x128xf32>
    %78 = vector.extract_strided_slice %75 {offsets = [0, 0], sizes = [1, 128], strides = [1, 1]} : vector<3x128xf32> to vector<1x128xf32>
    %79 = vector.extract_strided_slice %75 {offsets = [1, 0], sizes = [1, 128], strides = [1, 1]} : vector<3x128xf32> to vector<1x128xf32>
    %80 = vector.extract_strided_slice %75 {offsets = [2, 0], sizes = [1, 128], strides = [1, 1]} : vector<3x128xf32> to vector<1x128xf32>
    %cst_26 = arith.constant dense<0.000000e+00> : vector<8x128xf32>
    %81 = tpu.matmul %73, %77, %cst_26 {dimension_numbers = #tpu.dot_dimension_numbers<[1], [0], [0], [1], [0, 0, 1, 1], [], []>} : vector<8x128xf32>, vector<128x128xf32>, vector<8x128xf32> -> vector<8x128xf32>
    %82 = vector.broadcast %78 : vector<1x128xf32> to vector<8x128xf32>
    %83 = arith.addf %81, %82 : vector<8x128xf32>
    %cst_27 = arith.constant 0.000000e+00 : f32
    %84 = vector.broadcast %cst_27 : f32 to vector<8x128xf32>
    %85 = arith.maximumf %83, %84 : vector<8x128xf32>
    %cst_28 = arith.constant dense<0.000000e+00> : vector<8xf32>
    %86 = vector.multi_reduction <add>, %85, %cst_28 [1] : vector<8x128xf32> to vector<8xf32>
    %87 = vector.shape_cast %86 : vector<8xf32> to vector<8x1xf32>
    %cst_29 = arith.constant 3.125000e-02 : f32
    %88 = vector.broadcast %cst_29 : f32 to vector<8x1xf32>
    %89 = arith.mulf %87, %88 : vector<8x1xf32>
    %90 = vector.broadcast %89 : vector<8x1xf32> to vector<8x128xf32>
    %91 = arith.subf %85, %90 : vector<8x128xf32>
    %92 = vector.broadcast %9 : vector<1x128xf32> to vector<8x128xf32>
    %93 = arith.mulf %91, %92 : vector<8x128xf32>
    %94 = arith.mulf %93, %93 : vector<8x128xf32>
    %cst_30 = arith.constant dense<0.000000e+00> : vector<8xf32>
    %95 = vector.multi_reduction <add>, %94, %cst_30 [1] : vector<8x128xf32> to vector<8xf32>
    %96 = vector.shape_cast %95 : vector<8xf32> to vector<8x1xf32>
    %cst_31 = arith.constant 3.125000e-02 : f32
    %97 = vector.broadcast %cst_31 : f32 to vector<8x1xf32>
    %98 = arith.mulf %96, %97 : vector<8x1xf32>
    %cst_32 = arith.constant 9.99999974E-6 : f32
    %99 = vector.broadcast %cst_32 : f32 to vector<8x1xf32>
    %100 = arith.addf %98, %99 : vector<8x1xf32>
    %101 = math.rsqrt %100 : vector<8x1xf32>
    %102 = vector.broadcast %101 : vector<8x1xf32> to vector<8x128xf32>
    %103 = arith.mulf %91, %102 : vector<8x128xf32>
    %104 = vector.broadcast %79 : vector<1x128xf32> to vector<8x128xf32>
    %105 = arith.mulf %103, %104 : vector<8x128xf32>
    %106 = vector.broadcast %80 : vector<1x128xf32> to vector<8x128xf32>
    %107 = arith.addf %105, %106 : vector<8x128xf32>
    %c0_33 = arith.constant 0 : index
    %c0_34 = arith.constant 0 : index
    %108 = vector.load %arg7[%c0_33, %c0_34] : memref<8x128xf32, #tpu.memory_space<vmem>>, vector<8x128xf32>
    tpu.vector_store %arg7[%c0_33, %c0_34], %107 {strides = array<i32>} : memref<8x128xf32, #tpu.memory_space<vmem>>, vector<8x128xf32>,
    return
  }
  func.func @transform_0(%arg0: i32) -> (i32, i32) {
    %c0_i32 = arith.constant 0 : i32
    %c0_i32_0 = arith.constant 0 : i32
    return %arg0, %c0_i32 : i32, i32
  }
  func.func @transform_1(%arg0: i32) -> (i32, i32) {
    %c0_i32 = arith.constant 0 : i32
    %c0_i32_0 = arith.constant 0 : i32
    %c0_i32_1 = arith.constant 0 : i32
    return %c0_i32, %c0_i32_0 : i32, i32
  }
  func.func @transform_2(%arg0: i32) -> (i32, i32) {
    %c0_i32 = arith.constant 0 : i32
    %c0_i32_0 = arith.constant 0 : i32
    %c0_i32_1 = arith.constant 0 : i32
    return %c0_i32, %c0_i32_0 : i32, i32
  }
  func.func @transform_3(%arg0: i32) -> (i32, i32) {
    %c0_i32 = arith.constant 0 : i32
    %c0_i32_0 = arith.constant 0 : i32
    %c0_i32_1 = arith.constant 0 : i32
    return %c0_i32, %c0_i32_0 : i32, i32
  }
  func.func @transform_4(%arg0: i32) -> (i32, i32, i32) {
    %c0_i32 = arith.constant 0 : i32
    %c0_i32_0 = arith.constant 0 : i32
    %c0_i32_1 = arith.constant 0 : i32
    %c0_i32_2 = arith.constant 0 : i32
    return %c0_i32, %c0_i32_0, %c0_i32_1 : i32, i32, i32
  }
  func.func @transform_5(%arg0: i32) -> (i32, i32, i32) {
    %c0_i32 = arith.constant 0 : i32
    %c0_i32_0 = arith.constant 0 : i32
    %c0_i32_1 = arith.constant 0 : i32
    %c0_i32_2 = arith.constant 0 : i32
    return %c0_i32, %c0_i32_0, %c0_i32_1 : i32, i32, i32
  }
  func.func @transform_6(%arg0: i32) -> (i32, i32) {
    %c0_i32 = arith.constant 0 : i32
    %c0_i32_0 = arith.constant 0 : i32
    return %arg0, %c0_i32 : i32, i32
  }
}

</mosaic_0001>

<bundles_post_ra>
// kernel: mlp_base_forward.1
= control target key start
LH: loop header
LB: loop body
LE: loop exit
PB: predicated region body
PF: predicated region fallthrough
CT: control target
= control target key end

     0   :  { %11 = vsyncpa [#allocation3], 0  ;;  %s446_s0 = inlined_call_operand.vmem [shape: f32[8,24], index: 0, kind: input, shape index: {}]   ;;  %s447_s1 = inlined_call_operand.vmem [shape: f32[2,128], index: 1, kind: input, shape index: {}]   ;;  %s448_s2 = inlined_call_operand.hbm [shape: f32[128,128], index: 2, kind: input, shape index: {}]   ;;  %s449_s3 = inlined_call_operand.hbm [shape: f32[3,128], index: 3, kind: input, shape index: {}]   ;;  %s450_s4 = inlined_call_operand.hbm [shape: f32[1,128,128], index: 4, kind: input, shape index: {}]   ;;  %s451_s5 = inlined_call_operand.vmem [shape: f32[1,3,128], index: 5, kind: input, shape index: {}]   ;;  %s452_s6 = inlined_call_operand.hbm [shape: f32[8,32], index: 6, kind: output, shape index: {}]  }
   0x1   :  { %12 = vsyncpa [#allocation6], 0  ;;  %s36_s23 = sshll.u32 %s449_s3, 4  ;;  %s37_s23 = int_to_ptr.hbm [resolvable:$true] %s36_s23 }
   0x2   :  { %13 = vsyncpa [#allocation4], 0  ;;  %s372_s24 = smov [#allocation5]   ;;  %s22_s28 = sshll.u32 %s448_s2, 4  ;;  %s23_s28 = int_to_ptr.hbm [resolvable:$true] %s22_s28 }
   0x3   :  { %s38_s25 = sshll.u32 %s372_s24, 4  ;;  %s373_s29 = smov [#allocation2]   ;;  %s39_s25 = int_to_ptr.vmem [resolvable:$true] %s38_s25 }
   0x4   :  { %41 = dma.hbm_to_vmem [thread:$0]  %s37_s23, 64, %s39_s25, [#allocation6]  }
   0x5   :  { %s24_s30 = sshll.u32 %s373_s29, 4  ;;  %s374_s7 = smov 128   ;;  %s25_s30 = int_to_ptr.vmem [resolvable:$true] %s24_s30 }
   0x6   :  { %s375_s8 = smov 8   ;;  %s46_s3 = sshll.u32 %s450_s4, 4  ;;  %s47_s3 = int_to_ptr.hbm [resolvable:$true] %s46_s3 }
   0x7   :  { %30 = dma.hbm_to_vmem [thread:$0]  %s23_s28, 2048, %s25_s30, [#allocation3], %s374_s7, %s374_s7, %s375_s8  }
   0x8   :  { %s376_s11 = smov [#allocation7]  }
   0x9   :  { %s48_s12 = sshll.u32 %s376_s11, 4  ;;  %s49_s12 = int_to_ptr.vmem [resolvable:$true] %s48_s12 }
   0xa   :  { %54 = dma.hbm_to_vmem [thread:$0]  %s47_s3, 2048, %s49_s12, [#allocation6], %s374_s7, %s374_s7, %s375_s8  }
   0xb   :  { %366 = dma.done.wait [#allocation3], 2048  }
   0xc   :  { %367 = vsyncadd [#allocation3], 4294965248 }
   0xd   :  { %368 = dma.done.wait [#allocation6], 2112  }
   0xe   :  { %369 = vsyncadd [#allocation6], 4294965184  ;;  %v69_v0 = vlaneseq  ;;  %v377_v2 = vmov 0.0   ;;  %v77_v4 = vld [vmem:[%s446_s0] sm:$0xff]  ;;  %v124_v6 = vld [vmem:[#allocation2 + $0x78] sm:$0xff]  ;;  %s244_s18 = sshll.u32 %s452_s6, 4  ;;  %s245_s18 = int_to_ptr.hbm [resolvable:$true] %s244_s18 }
   0xf   :  { %v123_v7 = vld [vmem:[#allocation2 + $0x70] sm:$0xff]  ;;  %126 = vmatpush.msra.mxu0 %v124_v6  ;;  %v122_v13 = vld [vmem:[#allocation2 + $0x68] sm:$0xff]  ;;  %v121_v14 = vld [vmem:[#allocation2 + $0x60] sm:$0xff] }
  0x10   :  { %v423_v1 = vand.u32 127, %v69_v0  ;;  %v120_v15 = vld [vmem:[#allocation2 + $0x58] sm:$0xff]  ;;  %v119_v16 = vld [vmem:[#allocation2 + $0x50] sm:$0xff]  ;;  %v118_v17 = vld [vmem:[#allocation2 + $0x48] sm:$0xff] }
  0x11   :  { %127 = vmatpush.msra.mxu0 %v123_v7  ;;  %v117_v18 = vld [vmem:[#allocation2 + $0x40] sm:$0xff]  ;;  %v116_v19 = vld [vmem:[#allocation2 + $0x38] sm:$0xff]  ;;  %v115_v20 = vld [vmem:[#allocation2 + $0x30] sm:$0xff] }
  0x12   :  { %vm71_vm0 = vcmp.lt.s32.totalorder %v423_v1, 24  ;;  %v114_v21 = vld [vmem:[#allocation2 + $0x28] sm:$0xff]  ;;  %v113_v22 = vld [vmem:[#allocation2 + $0x20] sm:$0xff]  ;;  %v112_v23 = vld [vmem:[#allocation2 + $0x18] sm:$0xff]  ;;  %vm74_vm5 = vcmp.lt.s32.totalorder %v423_v1, 32 }
  0x13   :  { %v255_v3 = vsel %vm71_vm0, 1.0, %v377_v2  ;;  %128 = vmatpush.msra.mxu0 %v122_v13  ;;  %v111_v24 = vld [vmem:[#allocation2 + $0x10] sm:$0xff]  ;;  %v110_v25 = vld [vmem:[#allocation2 + $0x8] sm:$0xff]  ;;  %v109_v26 = vld [vmem:[#allocation2] sm:$0xff]  ;;  %v256_v52 = vsel %vm74_vm5, 1.0, %v377_v2 }
  0x14   :  { %vm78_vm1 = vcmp.gt.f32.partialorder %v255_v3, 0.0  ;;  %v82_v35 = vld [vmem:[%s447_s1] sm:$0x3]  ;;  %v187_v49 = vld [vmem:[#allocation7 + $0x70] sm:$0xff]  ;;  %v186_v56 = vld [vmem:[#allocation7 + $0x68] sm:$0xff] }
  0x15   :  { %v81_v5 = vsel %vm78_vm1, %v77_v4, 0.0  ;;  %129 = vmatpush.msra.mxu0 %v121_v14  ;;  %v104_v37 = vperm.slane %v82_v35, 0  ;;  %v106_v40 = vperm.slane %v82_v35, 1  ;;  %v433_v43 = vld [vmem:[#allocation5] sm:$0x7]  ;;  %v185_v57 = vld [vmem:[#allocation7 + $0x60] sm:$0xff] }
  0x16   :  { %83 = vadd.xlane.f32.xlu0 %v81_v5  ;;  %v125_v44 = vperm.slane %v433_v43, 0  ;;  %v188_v48 = vld [vmem:[#allocation7 + $0x78] sm:$0xff]  ;;  %v183_v59 = vld [vmem:[#allocation7 + $0x50] sm:$0xff]  ;;  %v182_v60 = vld [vmem:[#allocation7 + $0x48] sm:$0xff] }
  0x17   :  { %130 = vmatpush.msra.mxu0 %v120_v15  ;;  %190 = vmatpush.msra.mxu1 %v188_v48  ;;  %v184_v58 = vld [vmem:[#allocation7 + $0x58] sm:$0xff]  ;;  %v181_v61 = vld [vmem:[#allocation7 + $0x40] sm:$0xff]  ;;  %v179_v63 = vld [vmem:[#allocation7 + $0x30] sm:$0xff]  ;;  %v168_v15 = vperm.slane %v433_v43, 1 }
  0x18   :  { %v180_v62 = vld [vmem:[#allocation7 + $0x38] sm:$0xff]  ;;  %v178_v0 = vld [vmem:[#allocation7 + $0x28] sm:$0xff]  ;;  %v177_v1 = vld [vmem:[#allocation7 + $0x20] sm:$0xff] }
  0x19   :  { %131 = vmatpush.msra.mxu0 %v119_v16  ;;  %191 = vmatpush.msra.mxu1 %v187_v49  ;;  %v176_v2 = vld [vmem:[#allocation7 + $0x18] sm:$0xff]  ;;  %v174_v4 = vld [vmem:[#allocation7 + $0x8] sm:$0xff] }
  0x1b   :  { %132 = vmatpush.msra.mxu0 %v118_v17  ;;  %192 = vmatpush.msra.mxu1 %v186_v56 }
  0x1d   :  { %133 = vmatpush.msra.mxu0 %v117_v18  ;;  %193 = vmatpush.msra.mxu1 %v185_v57  ;;  %v170_v18 = vperm.slane %v433_v43, 2 }
  0x1f   :  { %134 = vmatpush.msra.mxu0 %v116_v19  ;;  %194 = vmatpush.msra.mxu1 %v184_v58 }
  0x21   :  { %135 = vmatpush.msra.mxu0 %v115_v20  ;;  %195 = vmatpush.msra.mxu1 %v183_v59 }
  0x23   :  { %136 = vmatpush.msra.mxu0 %v114_v21  ;;  %196 = vmatpush.msra.mxu1 %v182_v60  ;;  %v172_v21 = vld [vmem:[%s451_s5] sm:$0x7]  ;;  %s378_s5 = smov [#allocation8]  }
  0x24   :  { %s242_s15 = sshll.u32 %s378_s5, 4  ;;  %s243_s15 = int_to_ptr.vmem [resolvable:$true] %s242_s15 }
  0x25   :  { %137 = vmatpush.msra.mxu0 %v113_v22  ;;  %197 = vmatpush.msra.mxu1 %v181_v61  ;;  %v189_v22 = vperm.slane %v172_v21, 0 }
  0x27   :  { %138 = vmatpush.msra.mxu0 %v112_v23  ;;  %198 = vmatpush.msra.mxu1 %v180_v62 }
  0x29   :  { %139 = vmatpush.msra.mxu0 %v111_v24  ;;  %199 = vmatpush.msra.mxu1 %v179_v63 }
  0x2b   :  { %140 = vmatpush.msra.mxu0 %v110_v25  ;;  %200 = vmatpush.msra.mxu1 %v178_v0 }
  0x2d   :  { %141 = vmatpush.msra.mxu0 %v109_v26  ;;  %201 = vmatpush.msra.mxu1 %v177_v1 }
  0x2f   :  { %202 = vmatpush.msra.mxu1 %v176_v2 }
  0x89   :  { %v84_v8 = vpop.xlane.xlu0 %83 }
  0x8a   :  { %v85_v9 = vmul.f32 0.041666668, %v84_v8 }
  0x8c   :  { %v86_v10 = vsub.f32 %v81_v5, %v85_v9  ;;  %v173_v5 = vld [vmem:[#allocation7] sm:$0xff] }
  0x8e   :  { %v87_v11 = vmul.f32 %v255_v3, %v86_v10  ;;  %v175_v3 = vld [vmem:[#allocation7 + $0x10] sm:$0xff] }
  0x8f   :  { %203 = vmatpush.msra.mxu1 %v175_v3 }
  0x90   :  { %v88_v12 = vmul.f32 %v87_v11, %v87_v11 }
  0x91   :  { %204 = vmatpush.msra.mxu1 %v174_v4 }
  0x92   :  { %89 = vadd.xlane.f32.xlu0 %v88_v12 }
  0x93   :  { %205 = vmatpush.msra.mxu1 %v173_v5 }
 0x105   :  { %v90_v27 = vpop.xlane.xlu0 %89 }
 0x106   :  { %v91_v28 = vmul.f32 0.041666668, %v90_v27 }
 0x108   :  { %v92_v29 = vadd.f32 1e-05, %v91_v28 }
 0x10a   :  { %264 = vrsqrt.f32 %v92_v29  ;;  %vm99_vm3 = vweird.f32 %v92_v29 }
 0x110   :  { %v265_v30 = vpop.eup %264 }
 0x111   :  { %v94_v31 = vmul.f32 %v265_v30, %v92_v29  ;;  %vm100_vm2 = vweird.f32 %v265_v30 }
 0x112   :  { %vm101_vm4 = vmor %vm99_vm3, %vm100_vm2 }
 0x113   :  { %v95_v32 = vmul.f32 %v265_v30, %v94_v31 }
 0x115   :  { %v96_v33 = vmul.f32 0.5, %v95_v32 }
 0x117   :  { %v97_v34 = vsub.f32 1.5, %v96_v33 }
 0x119   :  { %v98_v36 = vmul.f32 %v265_v30, %v97_v34 }
 0x11b   :  { %v102_v38 = vsel %vm101_vm4, %v265_v30, %v98_v36 }
 0x11c   :  { %v103_v39 = vmul.f32 %v102_v38, %v86_v10 }
 0x11e   :  { %v105_v41 = vmul.f32 %v104_v37, %v103_v39 }
 0x120   :  { %v107_v42 = vadd.f32 %v106_v40, %v105_v41  ;;  %v232_v40 = vperm.slane %v172_v21, 1 }
 0x122   :  { %142 = vmatmul.f32.vlgmr.msra.gmra.mxu0 %v107_v42  ;;  %v234_v42 = vperm.slane %v172_v21, 2 }
 0x19f   :  { %v143_v45 = vpop.f32.mrf.mxu0 }
 0x1a0   :  { %v144_v46 = vadd.f32 %v143_v45, %v125_v44 }
 0x1a2   :  { %v146_v47 = vmax.f32 %v144_v46, 0.0 }
 0x1a4   :  { %147 = vadd.xlane.f32.xlu1 %v146_v47 }
 0x217   :  { %v148_v50 = vpop.xlane.xlu1 %147 }
 0x218   :  { %v149_v51 = vmul.f32 0.03125, %v148_v50 }
 0x21a   :  { %v150_v53 = vsub.f32 %v146_v47, %v149_v51 }
 0x21c   :  { %v151_v54 = vmul.f32 %v256_v52, %v150_v53 }
 0x21e   :  { %v152_v55 = vmul.f32 %v151_v54, %v151_v54 }
 0x220   :  { %153 = vadd.xlane.f32.xlu1 %v152_v55 }
 0x293   :  { %v154_v6 = vpop.xlane.xlu1 %153 }
 0x294   :  { %v155_v7 = vmul.f32 0.03125, %v154_v6 }
 0x296   :  { %v156_v8 = vadd.f32 1e-05, %v155_v7 }
 0x298   :  { %266 = vrsqrt.f32 %v156_v8  ;;  %vm163_vm7 = vweird.f32 %v156_v8 }
 0x29e   :  { %v267_v9 = vpop.eup %266 }
 0x29f   :  { %v158_v10 = vmul.f32 %v267_v9, %v156_v8  ;;  %vm164_vm6 = vweird.f32 %v267_v9 }
 0x2a0   :  { %vm165_vm8 = vmor %vm163_vm7, %vm164_vm6 }
 0x2a1   :  { %v159_v11 = vmul.f32 %v267_v9, %v158_v10 }
 0x2a3   :  { %v160_v12 = vmul.f32 0.5, %v159_v11 }
 0x2a5   :  { %v161_v13 = vsub.f32 1.5, %v160_v12 }
 0x2a7   :  { %v162_v14 = vmul.f32 %v267_v9, %v161_v13 }
 0x2a9   :  { %v166_v16 = vsel %vm165_vm8, %v267_v9, %v162_v14 }
 0x2aa   :  { %v167_v17 = vmul.f32 %v166_v16, %v150_v53 }
 0x2ac   :  { %v169_v19 = vmul.f32 %v168_v15, %v167_v17 }
 0x2ae   :  { %v171_v20 = vadd.f32 %v170_v18, %v169_v19 }
 0x2b0   :  { %206 = vmatmul.f32.vlgmr.msra.gmra.mxu1 %v171_v20 }
 0x32d   :  { %v207_v23 = vpop.f32.mrf.mxu1 }
 0x32e   :  { %v208_v24 = vadd.f32 %v207_v23, %v189_v22 }
 0x330   :  { %v210_v25 = vmax.f32 %v208_v24, 0.0 }
 0x332   :  { %211 = vadd.xlane.f32.xlu2 %v210_v25 }
 0x3a5   :  { %v212_v26 = vpop.xlane.xlu2 %211 }
 0x3a6   :  { %v213_v27 = vmul.f32 0.03125, %v212_v26 }
 0x3a8   :  { %v214_v28 = vsub.f32 %v210_v25, %v213_v27 }
 0x3aa   :  { %v215_v29 = vmul.f32 %v256_v52, %v214_v28 }
 0x3ac   :  { %v216_v30 = vmul.f32 %v215_v29, %v215_v29 }
 0x3ae   :  { %217 = vadd.xlane.f32.xlu2 %v216_v30 }
 0x421   :  { %v218_v31 = vpop.xlane.xlu2 %217 }
 0x422   :  { %v219_v32 = vmul.f32 0.03125, %v218_v31 }
 0x424   :  { %v220_v33 = vadd.f32 1e-05, %v219_v32 }
 0x426   :  { %268 = vrsqrt.f32 %v220_v33  ;;  %vm227_vm10 = vweird.f32 %v220_v33 }
 0x42c   :  { %v269_v34 = vpop.eup %268 }
 0x42d   :  { %v222_v35 = vmul.f32 %v269_v34, %v220_v33  ;;  %vm228_vm9 = vweird.f32 %v269_v34 }
 0x42e   :  { %vm229_vm11 = vmor %vm227_vm10, %vm228_vm9 }
 0x42f   :  { %v223_v36 = vmul.f32 %v269_v34, %v222_v35 }
 0x431   :  { %v224_v37 = vmul.f32 0.5, %v223_v36 }
 0x433   :  { %v225_v38 = vsub.f32 1.5, %v224_v37 }
 0x435   :  { %v226_v39 = vmul.f32 %v269_v34, %v225_v38 }
 0x437   :  { %v230_v41 = vsel %vm229_vm11, %v269_v34, %v226_v39 }
 0x438   :  { %v231_v43 = vmul.f32 %v230_v41, %v214_v28 }
 0x43a   :  { %v233_v44 = vmul.f32 %v232_v40, %v231_v43 }
 0x43c   :  { %v235_v45 = vadd.f32 %v234_v42, %v233_v44 }
 0x43e   :  { %236 = vst [vmem:[#allocation8] sm:$0xff] %v235_v45 }
 0x43f   :  { %247 = dma.vmem_to_hbm [thread:$0]  %s243_s15, 128, %s245_s18, [#allocation4]  }
 0x440   :  { %370 = dma.done.wait [#allocation4], 128  }
 0x441   :  { %371 = vsyncadd [#allocation4], 4294967168 }
 0x442   :  { %252 = vsyncpa [#allocation3], 1 }
 0x443   :  { %253 = vsyncpa [#allocation6], 1 }
 0x444   :  { %254 = vsyncpa [#allocation4], 1 }

</bundles_post_ra>
